<compile_context>
chip_gen: v7x
topology: tpu7x:2x2x1
jax: 0.10.0
libtpu: 0.0.40
codegen_flags: <defaults>
</compile_context>

<pallas_src>
import jax
import jax.numpy as jnp
from jax import lax
from jax.experimental import pallas as pl
from jax.experimental.pallas import tpu as pltpu


def _sigmoid(x):
    # 1 / (1 + exp(-x)) with both exp and the (approx) reciprocal on the EUP.
    return pl.reciprocal(1.0 + jnp.exp(-x), approx=True)


def _lstm_agg_kernel(x_ref, wih_ref, whh_ref, b_ref, out_ref, xg_ref):
    """
    x_ref  : (T*tb, F)   bf16  time-major rows: row t*tb + r == (timestep t, node r)
    wih_ref: (F, 4H)     bf16  input->gate weights (W_ih^T), gate order (i, f, g, o)
    whh_ref: (H, 4H)     bf16  hidden->gate weights (W_hh^T)
    b_ref  : (1, 4H)     f32   combined bias (b_ih + b_hh)
    out_ref: (tb, H)     f32   h_T for this row-block
    xg_ref : (T*tb, 4H)  f32   VMEM scratch: input projections for all timesteps
    """
    TB, _ = x_ref.shape
    tb, H = out_ref.shape
    T = TB // tb

    # (1) Fused input projection for ALL timesteps: one bf16 MXU matmul,
    #     f32 accumulation, lane-dense (4H = 128) output.
    xg_ref[...] = lax.dot_general(
        x_ref[...], wih_ref[...], (((1,), (0,)), ((), ())),
        preferred_element_type=jnp.float32) + b_ref[...]

    whh = whh_ref[...]  # (H, 4H) bf16, hoisted out of the recurrence

    # (2) Sequential LSTM recurrence over T (tiny per-step matmul + EUP gates).
    def step(t, carry):
        h, c = carry                                           # f32 (tb, H)
        row0 = pl.multiple_of(t * tb, tb)
        g = xg_ref[pl.ds(row0, tb), :] + jnp.dot(
            h.astype(jnp.bfloat16), whh, preferred_element_type=jnp.float32)
        i = _sigmoid(g[:, 0 * H:1 * H])
        f = _sigmoid(g[:, 1 * H:2 * H])
        g_c = jnp.tanh(g[:, 2 * H:3 * H])
        o = _sigmoid(g[:, 3 * H:4 * H])
        c_new = f * c + i * g_c
        h_new = o * jnp.tanh(c_new)
        return h_new, c_new

    h0 = jnp.zeros((tb, H), jnp.float32)
    c0 = jnp.zeros((tb, H), jnp.float32)
    h_last, _ = lax.fori_loop(0, T, step, (h0, c0), unroll=True)
    out_ref[...] = h_last.astype(out_ref.dtype)


def lstm_aggregate(neighbours, w_ih, w_hh, b_ih, b_hh, *, block_b=16):
    """neighbours: (B, T, F) f32, already neighbour-permuted.
       w_ih: (4H, F), w_hh: (4H, H), b_ih/b_hh: (4H,)  (PyTorch LSTM layout,
       gate order i, f, g, o).  Returns h_T: (B, H) f32."""
    B, T, F = neighbours.shape
    H4, H = w_hh.shape
    assert H4 == 4 * H and w_ih.shape == (4 * H, F)

    # Pad the node axis up to a multiple of the row-block size.
    pad = (-B) % block_b
    Bp = B + pad
    x = neighbours if pad == 0 else jnp.pad(neighbours, ((0, pad), (0, 0), (0, 0)))
    nb = Bp // block_b

    # Pre-block x so each grid step gets a contiguous 2-D (T*block_b, F) slab
    # (time-major inside the block: row t*block_b + r) -> no in-kernel reshape,
    # one big fused MXU matmul per block.  bf16 halves the HBM bytes.
    x_blk = (x.reshape(nb, block_b, T, F)
               .transpose(0, 2, 1, 3)
               .reshape(nb, T * block_b, F)
               .astype(jnp.bfloat16))
    wih_t = jnp.transpose(w_ih).astype(jnp.bfloat16)             # (F, 4H)
    whh_t = jnp.transpose(w_hh).astype(jnp.bfloat16)             # (H, 4H)
    bias = (b_ih + b_hh).reshape(1, 4 * H).astype(jnp.float32)   # (1, 4H)

    cost = pl.CostEstimate(
        flops=2 * Bp * T * F * 4 * H + 2 * Bp * T * H * 4 * H + 10 * Bp * T * H,
        transcendentals=8 * Bp * T * H,
        bytes_accessed=(x_blk.size * 2 + wih_t.size * 2 + whh_t.size * 2
                        + bias.size * 4 + Bp * H * 4),
    )

    out = pl.pallas_call(
        _lstm_agg_kernel,
        out_shape=jax.ShapeDtypeStruct((Bp, H), jnp.float32),
        grid_spec=pltpu.PrefetchScalarGridSpec(
            num_scalar_prefetch=0,
            grid=(nb,),
            in_specs=[
                pl.BlockSpec((None, T * block_b, F), lambda b: (b, 0, 0)),
                pl.BlockSpec((F, 4 * H), lambda b: (0, 0)),
                pl.BlockSpec((H, 4 * H), lambda b: (0, 0)),
                pl.BlockSpec((1, 4 * H), lambda b: (0, 0)),
            ],
            out_specs=pl.BlockSpec((block_b, H), lambda b: (b, 0)),
            scratch_shapes=[pltpu.VMEM((T * block_b, 4 * H), jnp.float32)],
        ),
        compiler_params=pltpu.CompilerParams(
            dimension_semantics=("parallel",)),
        cost_estimate=cost,
    )(x_blk, wih_t, whh_t, bias)
    return out[:B]


def lstm_aggregator_forward(neighbours, params, perm_key):
    """Forward of LSTMAggregator: random neighbour shuffle + LSTM, return
       last-timestep hidden state c = lstm_out[:, -1, :]."""
    T = neighbours.shape[1]
    # torch.randperm equivalent (one permutation shared across all rows) — glue.
    perm = jax.random.permutation(perm_key, T)
    x = jnp.take(neighbours, perm, axis=1)
    # TODO(synk): the stateful `self.hidden = ...` update is not representable
    # (and is unused by the returned value — forward() uses zero initial state).
    return lstm_aggregate(x, params["w_ih"], params["w_hh"],
                          params["b_ih"], params["b_hh"])


# --------------------------------- main -------------------------------------

def _xavier_uniform(key, shape, gain):
    fan_out, fan_in = shape
    bound = gain * (6.0 / (fan_in + fan_out)) ** 0.5
    return jax.random.uniform(key, shape, jnp.float32, -bound, bound)


if __name__ == "__main__":
    key = jax.random.PRNGKey(0)
    k_x, k_perm, k1, k2, k3, k4 = jax.random.split(key, 6)

    # small shapes: B=32 destination nodes, T=8 neighbour messages each,
    # in_feats=32, hidden_feats=32  (4H = 128 -> lane-dense gate matmuls)
    B, T, F, H = 32, 8, 32, 32

    neighbours = jax.random.normal(k_x, (B, T, F), jnp.float32)

    gain = 2.0 ** 0.5                       # nn.init.calculate_gain('relu')
    bnd = 1.0 / (H ** 0.5)                  # PyTorch LSTM default bias init
    params = {
        "w_ih": _xavier_uniform(k1, (4 * H, F), gain),
        "w_hh": _xavier_uniform(k2, (4 * H, H), gain),
        "b_ih": jax.random.uniform(k3, (4 * H,), jnp.float32, -bnd, bnd),
        "b_hh": jax.random.uniform(k4, (4 * H,), jnp.float32, -bnd, bnd),
    }

    c = lstm_aggregator_forward(neighbours, params, k_perm)
    jax.block_until_ready(c)
    assert c.shape == (B, H)
    assert not bool(jnp.any(jnp.isnan(c)))
    print("KERNEL_OK")
</pallas_src>

<mosaic_0001>
module attributes {stable_mosaic.version = 11 : i64} {
  func.func @_lstm_agg_kernel(%arg0: i32, %arg1: memref<1x128x32xbf16, #tpu.memory_space<vmem>>, %arg2: memref<32x128xbf16, #tpu.memory_space<vmem>>, %arg3: memref<32x128xbf16, #tpu.memory_space<vmem>>, %arg4: memref<1x128xf32, #tpu.memory_space<vmem>>, %arg5: memref<16x32xf32, #tpu.memory_space<vmem>>, %arg6: memref<128x128xf32, #tpu.memory_space<vmem>>) attributes {dimension_semantics = [#tpu.dimension_semantics<parallel>], iteration_bounds = array<i64: 2>, scalar_prefetch = 0 : i64, scratch_operands = 1 : i64, tpu.core_type = #tpu.core_type<tc>, window_params = [{transform_indices = @transform_0, window_bounds = array<i64: 1, 128, 32>}, {pipeline_mode = #tpu.pipeline_mode<synchronous>, transform_indices = @transform_1, window_bounds = array<i64: 32, 128>}, {pipeline_mode = #tpu.pipeline_mode<synchronous>, transform_indices = @transform_2, window_bounds = array<i64: 32, 128>}, {pipeline_mode = #tpu.pipeline_mode<synchronous>, transform_indices = @transform_3, window_bounds = array<i64: 1, 128>}, {transform_indices = @transform_4, window_bounds = array<i64: 16, 32>}]} {
    %c0 = arith.constant 0 : index
    %c0_0 = arith.constant 0 : index
    %c0_1 = arith.constant 0 : index
    %0 = vector.load %arg1[%c0, %c0_0, %c0_1] : memref<1x128x32xbf16, #tpu.memory_space<vmem>>, vector<1x128x32xbf16>
    %1 = vector.shape_cast %0 : vector<1x128x32xbf16> to vector<128x32xbf16>
    %c0_2 = arith.constant 0 : index
    %c0_3 = arith.constant 0 : index
    %2 = vector.load %arg2[%c0_2, %c0_3] : memref<32x128xbf16, #tpu.memory_space<vmem>>, vector<32x128xbf16>
    %cst = arith.constant dense<0.000000e+00> : vector<128x128xf32>
    %3 = tpu.matmul %1, %2, %cst {dimension_numbers = #tpu.dot_dimension_numbers<[1], [0], [0], [1], [0, 0, 1, 1], [], []>} : vector<128x32xbf16>, vector<32x128xbf16>, vector<128x128xf32> -> vector<128x128xf32>
    %c0_4 = arith.constant 0 : index
    %c0_5 = arith.constant 0 : index
    %4 = vector.load %arg4[%c0_4, %c0_5] : memref<1x128xf32, #tpu.memory_space<vmem>>, vector<1x128xf32>
    %5 = vector.broadcast %4 : vector<1x128xf32> to vector<128x128xf32>
    %6 = arith.addf %3, %5 : vector<128x128xf32>
    %c0_6 = arith.constant 0 : index
    %c0_7 = arith.constant 0 : index
    %7 = vector.load %arg6[%c0_6, %c0_7] : memref<128x128xf32, #tpu.memory_space<vmem>>, vector<128x128xf32>
    tpu.vector_store %arg6[%c0_6, %c0_7], %6 {strides = array<i32>} : memref<128x128xf32, #tpu.memory_space<vmem>>, vector<128x128xf32>,
    %c0_8 = arith.constant 0 : index
    %c0_9 = arith.constant 0 : index
    %8 = vector.load %arg3[%c0_8, %c0_9] : memref<32x128xbf16, #tpu.memory_space<vmem>>, vector<32x128xbf16>
    %cst_10 = arith.constant 0.000000e+00 : f32
    %9 = vector.broadcast %cst_10 : f32 to vector<16x32xf32>
    %cst_11 = arith.constant 0.000000e+00 : f32
    %10 = vector.broadcast %cst_11 : f32 to vector<16x32xf32>
    %c0_i32 = arith.constant 0 : i32
    %c16_i32 = arith.constant 16 : i32
    %11 = arith.muli %c0_i32, %c16_i32 : i32
    %12 = tpu.assume_multiple %11, 16 : i32
    %13 = arith.index_cast %12 : i32 to index
    %c0_12 = arith.constant 0 : index
    %14 = vector.load %arg6[%13, %c0_12] : memref<128x128xf32, #tpu.memory_space<vmem>>, vector<16x128xf32>
    %15 = arith.truncf %9 : vector<16x32xf32> to vector<16x32xbf16>
    %cst_13 = arith.constant dense<0.000000e+00> : vector<16x128xf32>
    %16 = tpu.matmul %15, %8, %cst_13 {dimension_numbers = #tpu.dot_dimension_numbers<[1], [0], [0], [1], [0, 0, 1, 1], [], []>} : vector<16x32xbf16>, vector<32x128xbf16>, vector<16x128xf32> -> vector<16x128xf32>
    %17 = arith.addf %14, %16 : vector<16x128xf32>
    %18 = vector.extract_strided_slice %17 {offsets = [0, 0], sizes = [16, 32], strides = [1, 1]} : vector<16x128xf32> to vector<16x32xf32>
    %cst_14 = arith.constant 0.000000e+00 : f32
    %19 = vector.broadcast %cst_14 : f32 to vector<16x32xf32>
    %20 = arith.subf %19, %18 : vector<16x32xf32>
    %21 = math.exp %20 : vector<16x32xf32>
    %cst_15 = arith.constant 1.000000e+00 : f32
    %22 = vector.broadcast %cst_15 : f32 to vector<16x32xf32>
    %23 = arith.addf %22, %21 : vector<16x32xf32>
    %24 = tpu.reciprocal %23 {approx = true} : vector<16x32xf32> -> vector<16x32xf32>
    %25 = vector.extract_strided_slice %17 {offsets = [0, 32], sizes = [16, 32], strides = [1, 1]} : vector<16x128xf32> to vector<16x32xf32>
    %cst_16 = arith.constant 0.000000e+00 : f32
    %26 = vector.broadcast %cst_16 : f32 to vector<16x32xf32>
    %27 = arith.subf %26, %25 : vector<16x32xf32>
    %28 = math.exp %27 : vector<16x32xf32>
    %cst_17 = arith.constant 1.000000e+00 : f32
    %29 = vector.broadcast %cst_17 : f32 to vector<16x32xf32>
    %30 = arith.addf %29, %28 : vector<16x32xf32>
    %31 = tpu.reciprocal %30 {approx = true} : vector<16x32xf32> -> vector<16x32xf32>
    %32 = vector.extract_strided_slice %17 {offsets = [0, 64], sizes = [16, 32], strides = [1, 1]} : vector<16x128xf32> to vector<16x32xf32>
    %33 = math.tanh %32 : vector<16x32xf32>
    %34 = vector.extract_strided_slice %17 {offsets = [0, 96], sizes = [16, 32], strides = [1, 1]} : vector<16x128xf32> to vector<16x32xf32>
    %cst_18 = arith.constant 0.000000e+00 : f32
    %35 = vector.broadcast %cst_18 : f32 to vector<16x32xf32>
    %36 = arith.subf %35, %34 : vector<16x32xf32>
    %37 = math.exp %36 : vector<16x32xf32>
    %cst_19 = arith.constant 1.000000e+00 : f32
    %38 = vector.broadcast %cst_19 : f32 to vector<16x32xf32>
    %39 = arith.addf %38, %37 : vector<16x32xf32>
    %40 = tpu.reciprocal %39 {approx = true} : vector<16x32xf32> -> vector<16x32xf32>
    %41 = arith.mulf %31, %10 : vector<16x32xf32>
    %42 = arith.mulf %24, %33 : vector<16x32xf32>
    %43 = arith.addf %41, %42 : vector<16x32xf32>
    %44 = math.tanh %43 : vector<16x32xf32>
    %45 = arith.mulf %40, %44 : vector<16x32xf32>
    %c1_i32 = arith.constant 1 : i32
    %c16_i32_20 = arith.constant 16 : i32
    %46 = arith.muli %c1_i32, %c16_i32_20 : i32
    %47 = tpu.assume_multiple %46, 16 : i32
    %48 = arith.index_cast %47 : i32 to index
    %c0_21 = arith.constant 0 : index
    %49 = vector.load %arg6[%48, %c0_21] : memref<128x128xf32, #tpu.memory_space<vmem>>, vector<16x128xf32>
    %50 = arith.truncf %45 : vector<16x32xf32> to vector<16x32xbf16>
    %cst_22 = arith.constant dense<0.000000e+00> : vector<16x128xf32>
    %51 = tpu.matmul %50, %8, %cst_22 {dimension_numbers = #tpu.dot_dimension_numbers<[1], [0], [0], [1], [0, 0, 1, 1], [], []>} : vector<16x32xbf16>, vector<32x128xbf16>, vector<16x128xf32> -> vector<16x128xf32>
    %52 = arith.addf %49, %51 : vector<16x128xf32>
    %53 = vector.extract_strided_slice %52 {offsets = [0, 0], sizes = [16, 32], strides = [1, 1]} : vector<16x128xf32> to vector<16x32xf32>
    %cst_23 = arith.constant 0.000000e+00 : f32
    %54 = vector.broadcast %cst_23 : f32 to vector<16x32xf32>
    %55 = arith.subf %54, %53 : vector<16x32xf32>
    %56 = math.exp %55 : vector<16x32xf32>
    %cst_24 = arith.constant 1.000000e+00 : f32
    %57 = vector.broadcast %cst_24 : f32 to vector<16x32xf32>
    %58 = arith.addf %57, %56 : vector<16x32xf32>
    %59 = tpu.reciprocal %58 {approx = true} : vector<16x32xf32> -> vector<16x32xf32>
    %60 = vector.extract_strided_slice %52 {offsets = [0, 32], sizes = [16, 32], strides = [1, 1]} : vector<16x128xf32> to vector<16x32xf32>
    %cst_25 = arith.constant 0.000000e+00 : f32
    %61 = vector.broadcast %cst_25 : f32 to vector<16x32xf32>
    %62 = arith.subf %61, %60 : vector<16x32xf32>
    %63 = math.exp %62 : vector<16x32xf32>
    %cst_26 = arith.constant 1.000000e+00 : f32
    %64 = vector.broadcast %cst_26 : f32 to vector<16x32xf32>
    %65 = arith.addf %64, %63 : vector<16x32xf32>
    %66 = tpu.reciprocal %65 {approx = true} : vector<16x32xf32> -> vector<16x32xf32>
    %67 = vector.extract_strided_slice %52 {offsets = [0, 64], sizes = [16, 32], strides = [1, 1]} : vector<16x128xf32> to vector<16x32xf32>
    %68 = math.tanh %67 : vector<16x32xf32>
    %69 = vector.extract_strided_slice %52 {offsets = [0, 96], sizes = [16, 32], strides = [1, 1]} : vector<16x128xf32> to vector<16x32xf32>
    %cst_27 = arith.constant 0.000000e+00 : f32
    %70 = vector.broadcast %cst_27 : f32 to vector<16x32xf32>
    %71 = arith.subf %70, %69 : vector<16x32xf32>
    %72 = math.exp %71 : vector<16x32xf32>
    %cst_28 = arith.constant 1.000000e+00 : f32
    %73 = vector.broadcast %cst_28 : f32 to vector<16x32xf32>
    %74 = arith.addf %73, %72 : vector<16x32xf32>
    %75 = tpu.reciprocal %74 {approx = true} : vector<16x32xf32> -> vector<16x32xf32>
    %76 = arith.mulf %66, %43 : vector<16x32xf32>
    %77 = arith.mulf %59, %68 : vector<16x32xf32>
    %78 = arith.addf %76, %77 : vector<16x32xf32>
    %79 = math.tanh %78 : vector<16x32xf32>
    %80 = arith.mulf %75, %79 : vector<16x32xf32>
    %c2_i32 = arith.constant 2 : i32
    %c16_i32_29 = arith.constant 16 : i32
    %81 = arith.muli %c2_i32, %c16_i32_29 : i32
    %82 = tpu.assume_multiple %81, 16 : i32
    %83 = arith.index_cast %82 : i32 to index
    %c0_30 = arith.constant 0 : index
    %84 = vector.load %arg6[%83, %c0_30] : memref<128x128xf32, #tpu.memory_space<vmem>>, vector<16x128xf32>
    %85 = arith.truncf %80 : vector<16x32xf32> to vector<16x32xbf16>
    %cst_31 = arith.constant dense<0.000000e+00> : vector<16x128xf32>
    %86 = tpu.matmul %85, %8, %cst_31 {dimension_numbers = #tpu.dot_dimension_numbers<[1], [0], [0], [1], [0, 0, 1, 1], [], []>} : vector<16x32xbf16>, vector<32x128xbf16>, vector<16x128xf32> -> vector<16x128xf32>
    %87 = arith.addf %84, %86 : vector<16x128xf32>
    %88 = vector.extract_strided_slice %87 {offsets = [0, 0], sizes = [16, 32], strides = [1, 1]} : vector<16x128xf32> to vector<16x32xf32>
    %cst_32 = arith.constant 0.000000e+00 : f32
    %89 = vector.broadcast %cst_32 : f32 to vector<16x32xf32>
    %90 = arith.subf %89, %88 : vector<16x32xf32>
    %91 = math.exp %90 : vector<16x32xf32>
    %cst_33 = arith.constant 1.000000e+00 : f32
    %92 = vector.broadcast %cst_33 : f32 to vector<16x32xf32>
    %93 = arith.addf %92, %91 : vector<16x32xf32>
    %94 = tpu.reciprocal %93 {approx = true} : vector<16x32xf32> -> vector<16x32xf32>
    %95 = vector.extract_strided_slice %87 {offsets = [0, 32], sizes = [16, 32], strides = [1, 1]} : vector<16x128xf32> to vector<16x32xf32>
    %cst_34 = arith.constant 0.000000e+00 : f32
    %96 = vector.broadcast %cst_34 : f32 to vector<16x32xf32>
    %97 = arith.subf %96, %95 : vector<16x32xf32>
    %98 = math.exp %97 : vector<16x32xf32>
    %cst_35 = arith.constant 1.000000e+00 : f32
    %99 = vector.broadcast %cst_35 : f32 to vector<16x32xf32>
    %100 = arith.addf %99, %98 : vector<16x32xf32>
    %101 = tpu.reciprocal %100 {approx = true} : vector<16x32xf32> -> vector<16x32xf32>
    %102 = vector.extract_strided_slice %87 {offsets = [0, 64], sizes = [16, 32], strides = [1, 1]} : vector<16x128xf32> to vector<16x32xf32>
    %103 = math.tanh %102 : vector<16x32xf32>
    %104 = vector.extract_strided_slice %87 {offsets = [0, 96], sizes = [16, 32], strides = [1, 1]} : vector<16x128xf32> to vector<16x32xf32>
    %cst_36 = arith.constant 0.000000e+00 : f32
    %105 = vector.broadcast %cst_36 : f32 to vector<16x32xf32>
    %106 = arith.subf %105, %104 : vector<16x32xf32>
    %107 = math.exp %106 : vector<16x32xf32>
    %cst_37 = arith.constant 1.000000e+00 : f32
    %108 = vector.broadcast %cst_37 : f32 to vector<16x32xf32>
    %109 = arith.addf %108, %107 : vector<16x32xf32>
    %110 = tpu.reciprocal %109 {approx = true} : vector<16x32xf32> -> vector<16x32xf32>
    %111 = arith.mulf %101, %78 : vector<16x32xf32>
    %112 = arith.mulf %94, %103 : vector<16x32xf32>
    %113 = arith.addf %111, %112 : vector<16x32xf32>
    %114 = math.tanh %113 : vector<16x32xf32>
    %115 = arith.mulf %110, %114 : vector<16x32xf32>
    %c3_i32 = arith.constant 3 : i32
    %c16_i32_38 = arith.constant 16 : i32
    %116 = arith.muli %c3_i32, %c16_i32_38 : i32
    %117 = tpu.assume_multiple %116, 16 : i32
    %118 = arith.index_cast %117 : i32 to index
    %c0_39 = arith.constant 0 : index
    %119 = vector.load %arg6[%118, %c0_39] : memref<128x128xf32, #tpu.memory_space<vmem>>, vector<16x128xf32>
    %120 = arith.truncf %115 : vector<16x32xf32> to vector<16x32xbf16>
    %cst_40 = arith.constant dense<0.000000e+00> : vector<16x128xf32>
    %121 = tpu.matmul %120, %8, %cst_40 {dimension_numbers = #tpu.dot_dimension_numbers<[1], [0], [0], [1], [0, 0, 1, 1], [], []>} : vector<16x32xbf16>, vector<32x128xbf16>, vector<16x128xf32> -> vector<16x128xf32>
    %122 = arith.addf %119, %121 : vector<16x128xf32>
    %123 = vector.extract_strided_slice %122 {offsets = [0, 0], sizes = [16, 32], strides = [1, 1]} : vector<16x128xf32> to vector<16x32xf32>
    %cst_41 = arith.constant 0.000000e+00 : f32
    %124 = vector.broadcast %cst_41 : f32 to vector<16x32xf32>
    %125 = arith.subf %124, %123 : vector<16x32xf32>
    %126 = math.exp %125 : vector<16x32xf32>
    %cst_42 = arith.constant 1.000000e+00 : f32
    %127 = vector.broadcast %cst_42 : f32 to vector<16x32xf32>
    %128 = arith.addf %127, %126 : vector<16x32xf32>
    %129 = tpu.reciprocal %128 {approx = true} : vector<16x32xf32> -> vector<16x32xf32>
    %130 = vector.extract_strided_slice %122 {offsets = [0, 32], sizes = [16, 32], strides = [1, 1]} : vector<16x128xf32> to vector<16x32xf32>
    %cst_43 = arith.constant 0.000000e+00 : f32
    %131 = vector.broadcast %cst_43 : f32 to vector<16x32xf32>
    %132 = arith.subf %131, %130 : vector<16x32xf32>
    %133 = math.exp %132 : vector<16x32xf32>
    %cst_44 = arith.constant 1.000000e+00 : f32
    %134 = vector.broadcast %cst_44 : f32 to vector<16x32xf32>
    %135 = arith.addf %134, %133 : vector<16x32xf32>
    %136 = tpu.reciprocal %135 {approx = true} : vector<16x32xf32> -> vector<16x32xf32>
    %137 = vector.extract_strided_slice %122 {offsets = [0, 64], sizes = [16, 32], strides = [1, 1]} : vector<16x128xf32> to vector<16x32xf32>
    %138 = math.tanh %137 : vector<16x32xf32>
    %139 = vector.extract_strided_slice %122 {offsets = [0, 96], sizes = [16, 32], strides = [1, 1]} : vector<16x128xf32> to vector<16x32xf32>
    %cst_45 = arith.constant 0.000000e+00 : f32
    %140 = vector.broadcast %cst_45 : f32 to vector<16x32xf32>
    %141 = arith.subf %140, %139 : vector<16x32xf32>
    %142 = math.exp %141 : vector<16x32xf32>
    %cst_46 = arith.constant 1.000000e+00 : f32
    %143 = vector.broadcast %cst_46 : f32 to vector<16x32xf32>
    %144 = arith.addf %143, %142 : vector<16x32xf32>
    %145 = tpu.reciprocal %144 {approx = true} : vector<16x32xf32> -> vector<16x32xf32>
    %146 = arith.mulf %136, %113 : vector<16x32xf32>
    %147 = arith.mulf %129, %138 : vector<16x32xf32>
    %148 = arith.addf %146, %147 : vector<16x32xf32>
    %149 = math.tanh %148 : vector<16x32xf32>
    %150 = arith.mulf %145, %149 : vector<16x32xf32>
    %c4_i32 = arith.constant 4 : i32
    %c16_i32_47 = arith.constant 16 : i32
    %151 = arith.muli %c4_i32, %c16_i32_47 : i32
    %152 = tpu.assume_multiple %151, 16 : i32
    %153 = arith.index_cast %152 : i32 to index
    %c0_48 = arith.constant 0 : index
    %154 = vector.load %arg6[%153, %c0_48] : memref<128x128xf32, #tpu.memory_space<vmem>>, vector<16x128xf32>
    %155 = arith.truncf %150 : vector<16x32xf32> to vector<16x32xbf16>
    %cst_49 = arith.constant dense<0.000000e+00> : vector<16x128xf32>
    %156 = tpu.matmul %155, %8, %cst_49 {dimension_numbers = #tpu.dot_dimension_numbers<[1], [0], [0], [1], [0, 0, 1, 1], [], []>} : vector<16x32xbf16>, vector<32x128xbf16>, vector<16x128xf32> -> vector<16x128xf32>
    %157 = arith.addf %154, %156 : vector<16x128xf32>
    %158 = vector.extract_strided_slice %157 {offsets = [0, 0], sizes = [16, 32], strides = [1, 1]} : vector<16x128xf32> to vector<16x32xf32>
    %cst_50 = arith.constant 0.000000e+00 : f32
    %159 = vector.broadcast %cst_50 : f32 to vector<16x32xf32>
    %160 = arith.subf %159, %158 : vector<16x32xf32>
    %161 = math.exp %160 : vector<16x32xf32>
    %cst_51 = arith.constant 1.000000e+00 : f32
    %162 = vector.broadcast %cst_51 : f32 to vector<16x32xf32>
    %163 = arith.addf %162, %161 : vector<16x32xf32>
    %164 = tpu.reciprocal %163 {approx = true} : vector<16x32xf32> -> vector<16x32xf32>
    %165 = vector.extract_strided_slice %157 {offsets = [0, 32], sizes = [16, 32], strides = [1, 1]} : vector<16x128xf32> to vector<16x32xf32>
    %cst_52 = arith.constant 0.000000e+00 : f32
    %166 = vector.broadcast %cst_52 : f32 to vector<16x32xf32>
    %167 = arith.subf %166, %165 : vector<16x32xf32>
    %168 = math.exp %167 : vector<16x32xf32>
    %cst_53 = arith.constant 1.000000e+00 : f32
    %169 = vector.broadcast %cst_53 : f32 to vector<16x32xf32>
    %170 = arith.addf %169, %168 : vector<16x32xf32>
    %171 = tpu.reciprocal %170 {approx = true} : vector<16x32xf32> -> vector<16x32xf32>
    %172 = vector.extract_strided_slice %157 {offsets = [0, 64], sizes = [16, 32], strides = [1, 1]} : vector<16x128xf32> to vector<16x32xf32>
    %173 = math.tanh %172 : vector<16x32xf32>
    %174 = vector.extract_strided_slice %157 {offsets = [0, 96], sizes = [16, 32], strides = [1, 1]} : vector<16x128xf32> to vector<16x32xf32>
    %cst_54 = arith.constant 0.000000e+00 : f32
    %175 = vector.broadcast %cst_54 : f32 to vector<16x32xf32>
    %176 = arith.subf %175, %174 : vector<16x32xf32>
    %177 = math.exp %176 : vector<16x32xf32>
    %cst_55 = arith.constant 1.000000e+00 : f32
    %178 = vector.broadcast %cst_55 : f32 to vector<16x32xf32>
    %179 = arith.addf %178, %177 : vector<16x32xf32>
    %180 = tpu.reciprocal %179 {approx = true} : vector<16x32xf32> -> vector<16x32xf32>
    %181 = arith.mulf %171, %148 : vector<16x32xf32>
    %182 = arith.mulf %164, %173 : vector<16x32xf32>
    %183 = arith.addf %181, %182 : vector<16x32xf32>
    %184 = math.tanh %183 : vector<16x32xf32>
    %185 = arith.mulf %180, %184 : vector<16x32xf32>
    %c5_i32 = arith.constant 5 : i32
    %c16_i32_56 = arith.constant 16 : i32
    %186 = arith.muli %c5_i32, %c16_i32_56 : i32
    %187 = tpu.assume_multiple %186, 16 : i32
    %188 = arith.index_cast %187 : i32 to index
    %c0_57 = arith.constant 0 : index
    %189 = vector.load %arg6[%188, %c0_57] : memref<128x128xf32, #tpu.memory_space<vmem>>, vector<16x128xf32>
    %190 = arith.truncf %185 : vector<16x32xf32> to vector<16x32xbf16>
    %cst_58 = arith.constant dense<0.000000e+00> : vector<16x128xf32>
    %191 = tpu.matmul %190, %8, %cst_58 {dimension_numbers = #tpu.dot_dimension_numbers<[1], [0], [0], [1], [0, 0, 1, 1], [], []>} : vector<16x32xbf16>, vector<32x128xbf16>, vector<16x128xf32> -> vector<16x128xf32>
    %192 = arith.addf %189, %191 : vector<16x128xf32>
    %193 = vector.extract_strided_slice %192 {offsets = [0, 0], sizes = [16, 32], strides = [1, 1]} : vector<16x128xf32> to vector<16x32xf32>
    %cst_59 = arith.constant 0.000000e+00 : f32
    %194 = vector.broadcast %cst_59 : f32 to vector<16x32xf32>
    %195 = arith.subf %194, %193 : vector<16x32xf32>
    %196 = math.exp %195 : vector<16x32xf32>
    %cst_60 = arith.constant 1.000000e+00 : f32
    %197 = vector.broadcast %cst_60 : f32 to vector<16x32xf32>
    %198 = arith.addf %197, %196 : vector<16x32xf32>
    %199 = tpu.reciprocal %198 {approx = true} : vector<16x32xf32> -> vector<16x32xf32>
    %200 = vector.extract_strided_slice %192 {offsets = [0, 32], sizes = [16, 32], strides = [1, 1]} : vector<16x128xf32> to vector<16x32xf32>
    %cst_61 = arith.constant 0.000000e+00 : f32
    %201 = vector.broadcast %cst_61 : f32 to vector<16x32xf32>
    %202 = arith.subf %201, %200 : vector<16x32xf32>
    %203 = math.exp %202 : vector<16x32xf32>
    %cst_62 = arith.constant 1.000000e+00 : f32
    %204 = vector.broadcast %cst_62 : f32 to vector<16x32xf32>
    %205 = arith.addf %204, %203 : vector<16x32xf32>
    %206 = tpu.reciprocal %205 {approx = true} : vector<16x32xf32> -> vector<16x32xf32>
    %207 = vector.extract_strided_slice %192 {offsets = [0, 64], sizes = [16, 32], strides = [1, 1]} : vector<16x128xf32> to vector<16x32xf32>
    %208 = math.tanh %207 : vector<16x32xf32>
    %209 = vector.extract_strided_slice %192 {offsets = [0, 96], sizes = [16, 32], strides = [1, 1]} : vector<16x128xf32> to vector<16x32xf32>
    %cst_63 = arith.constant 0.000000e+00 : f32
    %210 = vector.broadcast %cst_63 : f32 to vector<16x32xf32>
    %211 = arith.subf %210, %209 : vector<16x32xf32>
    %212 = math.exp %211 : vector<16x32xf32>
    %cst_64 = arith.constant 1.000000e+00 : f32
    %213 = vector.broadcast %cst_64 : f32 to vector<16x32xf32>
    %214 = arith.addf %213, %212 : vector<16x32xf32>
    %215 = tpu.reciprocal %214 {approx = true} : vector<16x32xf32> -> vector<16x32xf32>
    %216 = arith.mulf %206, %183 : vector<16x32xf32>
    %217 = arith.mulf %199, %208 : vector<16x32xf32>
    %218 = arith.addf %216, %217 : vector<16x32xf32>
    %219 = math.tanh %218 : vector<16x32xf32>
    %220 = arith.mulf %215, %219 : vector<16x32xf32>
    %c6_i32 = arith.constant 6 : i32
    %c16_i32_65 = arith.constant 16 : i32
    %221 = arith.muli %c6_i32, %c16_i32_65 : i32
    %222 = tpu.assume_multiple %221, 16 : i32
    %223 = arith.index_cast %222 : i32 to index
    %c0_66 = arith.constant 0 : index
    %224 = vector.load %arg6[%223, %c0_66] : memref<128x128xf32, #tpu.memory_space<vmem>>, vector<16x128xf32>
    %225 = arith.truncf %220 : vector<16x32xf32> to vector<16x32xbf16>
    %cst_67 = arith.constant dense<0.000000e+00> : vector<16x128xf32>
    %226 = tpu.matmul %225, %8, %cst_67 {dimension_numbers = #tpu.dot_dimension_numbers<[1], [0], [0], [1], [0, 0, 1, 1], [], []>} : vector<16x32xbf16>, vector<32x128xbf16>, vector<16x128xf32> -> vector<16x128xf32>
    %227 = arith.addf %224, %226 : vector<16x128xf32>
    %228 = vector.extract_strided_slice %227 {offsets = [0, 0], sizes = [16, 32], strides = [1, 1]} : vector<16x128xf32> to vector<16x32xf32>
    %cst_68 = arith.constant 0.000000e+00 : f32
    %229 = vector.broadcast %cst_68 : f32 to vector<16x32xf32>
    %230 = arith.subf %229, %228 : vector<16x32xf32>
    %231 = math.exp %230 : vector<16x32xf32>
    %cst_69 = arith.constant 1.000000e+00 : f32
    %232 = vector.broadcast %cst_69 : f32 to vector<16x32xf32>
    %233 = arith.addf %232, %231 : vector<16x32xf32>
    %234 = tpu.reciprocal %233 {approx = true} : vector<16x32xf32> -> vector<16x32xf32>
    %235 = vector.extract_strided_slice %227 {offsets = [0, 32], sizes = [16, 32], strides = [1, 1]} : vector<16x128xf32> to vector<16x32xf32>
    %cst_70 = arith.constant 0.000000e+00 : f32
    %236 = vector.broadcast %cst_70 : f32 to vector<16x32xf32>
    %237 = arith.subf %236, %235 : vector<16x32xf32>
    %238 = math.exp %237 : vector<16x32xf32>
    %cst_71 = arith.constant 1.000000e+00 : f32
    %239 = vector.broadcast %cst_71 : f32 to vector<16x32xf32>
    %240 = arith.addf %239, %238 : vector<16x32xf32>
    %241 = tpu.reciprocal %240 {approx = true} : vector<16x32xf32> -> vector<16x32xf32>
    %242 = vector.extract_strided_slice %227 {offsets = [0, 64], sizes = [16, 32], strides = [1, 1]} : vector<16x128xf32> to vector<16x32xf32>
    %243 = math.tanh %242 : vector<16x32xf32>
    %244 = vector.extract_strided_slice %227 {offsets = [0, 96], sizes = [16, 32], strides = [1, 1]} : vector<16x128xf32> to vector<16x32xf32>
    %cst_72 = arith.constant 0.000000e+00 : f32
    %245 = vector.broadcast %cst_72 : f32 to vector<16x32xf32>
    %246 = arith.subf %245, %244 : vector<16x32xf32>
    %247 = math.exp %246 : vector<16x32xf32>
    %cst_73 = arith.constant 1.000000e+00 : f32
    %248 = vector.broadcast %cst_73 : f32 to vector<16x32xf32>
    %249 = arith.addf %248, %247 : vector<16x32xf32>
    %250 = tpu.reciprocal %249 {approx = true} : vector<16x32xf32> -> vector<16x32xf32>
    %251 = arith.mulf %241, %218 : vector<16x32xf32>
    %252 = arith.mulf %234, %243 : vector<16x32xf32>
    %253 = arith.addf %251, %252 : vector<16x32xf32>
    %254 = math.tanh %253 : vector<16x32xf32>
    %255 = arith.mulf %250, %254 : vector<16x32xf32>
    %c7_i32 = arith.constant 7 : i32
    %c16_i32_74 = arith.constant 16 : i32
    %256 = arith.muli %c7_i32, %c16_i32_74 : i32
    %257 = tpu.assume_multiple %256, 16 : i32
    %258 = arith.index_cast %257 : i32 to index
    %c0_75 = arith.constant 0 : index
    %259 = vector.load %arg6[%258, %c0_75] : memref<128x128xf32, #tpu.memory_space<vmem>>, vector<16x128xf32>
    %260 = arith.truncf %255 : vector<16x32xf32> to vector<16x32xbf16>
    %cst_76 = arith.constant dense<0.000000e+00> : vector<16x128xf32>
    %261 = tpu.matmul %260, %8, %cst_76 {dimension_numbers = #tpu.dot_dimension_numbers<[1], [0], [0], [1], [0, 0, 1, 1], [], []>} : vector<16x32xbf16>, vector<32x128xbf16>, vector<16x128xf32> -> vector<16x128xf32>
    %262 = arith.addf %259, %261 : vector<16x128xf32>
    %263 = vector.extract_strided_slice %262 {offsets = [0, 0], sizes = [16, 32], strides = [1, 1]} : vector<16x128xf32> to vector<16x32xf32>
    %cst_77 = arith.constant 0.000000e+00 : f32
    %264 = vector.broadcast %cst_77 : f32 to vector<16x32xf32>
    %265 = arith.subf %264, %263 : vector<16x32xf32>
    %266 = math.exp %265 : vector<16x32xf32>
    %cst_78 = arith.constant 1.000000e+00 : f32
    %267 = vector.broadcast %cst_78 : f32 to vector<16x32xf32>
    %268 = arith.addf %267, %266 : vector<16x32xf32>
    %269 = tpu.reciprocal %268 {approx = true} : vector<16x32xf32> -> vector<16x32xf32>
    %270 = vector.extract_strided_slice %262 {offsets = [0, 32], sizes = [16, 32], strides = [1, 1]} : vector<16x128xf32> to vector<16x32xf32>
    %cst_79 = arith.constant 0.000000e+00 : f32
    %271 = vector.broadcast %cst_79 : f32 to vector<16x32xf32>
    %272 = arith.subf %271, %270 : vector<16x32xf32>
    %273 = math.exp %272 : vector<16x32xf32>
    %cst_80 = arith.constant 1.000000e+00 : f32
    %274 = vector.broadcast %cst_80 : f32 to vector<16x32xf32>
    %275 = arith.addf %274, %273 : vector<16x32xf32>
    %276 = tpu.reciprocal %275 {approx = true} : vector<16x32xf32> -> vector<16x32xf32>
    %277 = vector.extract_strided_slice %262 {offsets = [0, 64], sizes = [16, 32], strides = [1, 1]} : vector<16x128xf32> to vector<16x32xf32>
    %278 = math.tanh %277 : vector<16x32xf32>
    %279 = vector.extract_strided_slice %262 {offsets = [0, 96], sizes = [16, 32], strides = [1, 1]} : vector<16x128xf32> to vector<16x32xf32>
    %cst_81 = arith.constant 0.000000e+00 : f32
    %280 = vector.broadcast %cst_81 : f32 to vector<16x32xf32>
    %281 = arith.subf %280, %279 : vector<16x32xf32>
    %282 = math.exp %281 : vector<16x32xf32>
    %cst_82 = arith.constant 1.000000e+00 : f32
    %283 = vector.broadcast %cst_82 : f32 to vector<16x32xf32>
    %284 = arith.addf %283, %282 : vector<16x32xf32>
    %285 = tpu.reciprocal %284 {approx = true} : vector<16x32xf32> -> vector<16x32xf32>
    %286 = arith.mulf %276, %253 : vector<16x32xf32>
    %287 = arith.mulf %269, %278 : vector<16x32xf32>
    %288 = arith.addf %286, %287 : vector<16x32xf32>
    %289 = math.tanh %288 : vector<16x32xf32>
    %290 = arith.mulf %285, %289 : vector<16x32xf32>
    %c8_i32 = arith.constant 8 : i32
    %c0_83 = arith.constant 0 : index
    %c0_84 = arith.constant 0 : index
    %291 = vector.load %arg5[%c0_83, %c0_84] : memref<16x32xf32, #tpu.memory_space<vmem>>, vector<16x32xf32>
    tpu.vector_store %arg5[%c0_83, %c0_84], %290 {strides = array<i32>} : memref<16x32xf32, #tpu.memory_space<vmem>>, vector<16x32xf32>,
    return
  }
  func.func @transform_0(%arg0: i32) -> (i32, i32, i32) {
    %c0_i32 = arith.constant 0 : i32
    %c0_i32_0 = arith.constant 0 : i32
    %c0_i32_1 = arith.constant 0 : i32
    return %arg0, %c0_i32, %c0_i32_0 : i32, i32, i32
  }
  func.func @transform_1(%arg0: i32) -> (i32, i32) {
    %c0_i32 = arith.constant 0 : i32
    %c0_i32_0 = arith.constant 0 : i32
    %c0_i32_1 = arith.constant 0 : i32
    return %c0_i32, %c0_i32_0 : i32, i32
  }
  func.func @transform_2(%arg0: i32) -> (i32, i32) {
    %c0_i32 = arith.constant 0 : i32
    %c0_i32_0 = arith.constant 0 : i32
    %c0_i32_1 = arith.constant 0 : i32
    return %c0_i32, %c0_i32_0 : i32, i32
  }
  func.func @transform_3(%arg0: i32) -> (i32, i32) {
    %c0_i32 = arith.constant 0 : i32
    %c0_i32_0 = arith.constant 0 : i32
    %c0_i32_1 = arith.constant 0 : i32
    return %c0_i32, %c0_i32_0 : i32, i32
  }
  func.func @transform_4(%arg0: i32) -> (i32, i32) {
    %c0_i32 = arith.constant 0 : i32
    %c0_i32_0 = arith.constant 0 : i32
    return %arg0, %c0_i32 : i32, i32
  }
}

</mosaic_0001>

<bundles_post_ra>
// kernel: tpu_custom_call.1
= control target key start
LH: loop header
LB: loop body
LE: loop exit
PB: predicated region body
PF: predicated region fallthrough
CT: control target
= control target key end

     0   :  { %9 = vsyncpa [#allocation4], 0  ;;  %s2062_s0 = inlined_call_operand.vmem [shape: bf16[2,128,32], index: 0, kind: input, shape index: {}]   ;;  %s2063_s1 = inlined_call_operand.vmem [shape: bf16[32,128], index: 1, kind: input, shape index: {}]   ;;  %s2064_s2 = inlined_call_operand.vmem [shape: bf16[32,128], index: 2, kind: input, shape index: {}]   ;;  %s2065_s3 = inlined_call_operand.vmem [shape: f32[1,128], index: 3, kind: input, shape index: {}]   ;;  %s2066_s4 = inlined_call_operand.hbm [shape: f32[32,32], index: 4, kind: output, shape index: {}]  }
   0x1   :  { %11 = vsyncpa [#allocation4 + $0x1], 0  ;;  %s1747_s15 = smov 0   ;;  %s1749_s16 = smov 0  }
   0x2   :  { %s1751_s17 = smov 0   ;;  %s1753_s18 = smov 0  }
   0x3 LB: > { %s1768_s19 = sadd.s32 4294967295, %s1712_s18   ;;  %s1304_s20 = sadd.s32 4294967294, %s1712_s18   ;;  %s1712_s18 = sphi %s1753_s18, %s2072_s18   ;;  %s1708_s17 = sphi %s1751_s17, %s2071_s17   ;;  %s1704_s16 = sphi %s1749_s16, %s2070_s16   ;;  %s1700_s15 = sphi %s1747_s15, %s2069_s15  }
   0x4   : > { %s1772_s21 = sadd.s32 1, %s1712_s18   ;;  %s113_s22 = sadd.s32 1, %s1708_s17 }
   0x5   : > { %s110_s23 = ssub.s32 %s1712_s18, %s1772_s21  ;;  %p123_p0 = scmp.ne.s32.totalorder %s1708_s17, %s1704_s16 }
   0x6   : > { %p111_p1 = scmp.eq.s32.totalorder %s110_s23, 0  ;;  %p124_p2 = scmp.eq.s32.totalorder %s1768_s19, 1 }
   0x7   : > { %p129_p3 = scmp.ne.s32.totalorder %s1704_s16, %s1700_s15  ;;  %p130_p4 = scmp.eq.s32.totalorder %s1304_s20, 1 }
   0x8   : > { %s1783_s24 = scalar_select %p111_p1, %s1708_s17, %s113_s22  }
   0x9   : > { %p1785_p5 = por %p124_p2, %p123_p0  ;;  %p1789_p6 = por %p130_p4, %p129_p3 }
   0xa   : > { %p1307_p7 = scmp.ge.s32.totalorder %s1712_s18, 1  ;;  %p165_p8 = scmp.lt.s32.totalorder %s1712_s18, 3 }
   0xc   : > { %p166_p9 = pnand %p1307_p7, %p165_p8 }
   0xd   : > { %v1510_v0 = vld [vmem:[%s2063_s1] sm:$0xff] (!%p166_p9)   ;;  %v1714_v1 = vmov (!%p166_p9), 0.0   ;;  %p191_p10 = scmp.lt.s32.totalorder (!%p166_p9), %s1768_s19, 1  ;;  %v1512_v3 = vld [vmem:[%s2063_s1 + $0x8] sm:$0xff] (!%p166_p9)   ;;  %vm1715_vm0 = vmmov (!%p166_p9), 0   ;;  %vm277_vm1 = vcmask (!%p166_p9), 261120  }
   0xe   : > { %169 = sbr.rel (%p166_p9) target bundleno = 5693 (0x163d), region = 36  ;;  %1400 = vmatprep.subr.bf16.mxu1 (!%p166_p9), %v1714_v1  ;;  %v1802_v2 = vld [vmem:[%s2064_s2] sm:$0xff] (!%p166_p9)   ;;  %1380 = vmatprep.subr.bf16.mxu0 (!%p166_p9), %v1510_v0  ;;  %v1812_v4 = vld [vmem:[%s2064_s2 + $0x8] sm:$0xff] (!%p166_p9)   ;;  %v1716_v7 = vmov (!%p166_p9), 0   ;;  %s1717_s22 = smov (!%p166_p9), 64  }
   0xf   : > { %1381 = vmatpush3.bf16.msra.mxu0 (!%p166_p9), %v1510_v0  ;;  %1401 = vmatpush3.bf16.msra.mxu1 (!%p166_p9), %v1802_v2  ;;  %v1843_v8 = vld [vmem:[%s2065_s3] ss:$0 sm:$0xff] (!%p166_p9)  ;;  %s1718_s23 = smov (!%p166_p9), 32   ;;  %s188_s27 = sand.u32 (!%p166_p9), 1, %s1704_s16  }
  0x10   : > { %1382 = vmatprep.subr.bf16.mxu0 (!%p166_p9), %v1512_v3  ;;  %1402 = vmatprep.subr.bf16.mxu1 (!%p166_p9), %v1714_v1  ;;  %s1308_s28 = sshll.u32 (!%p166_p9), %s188_s27, 4  ;;  %s1345_s5 = sshll.u32 (!%p166_p9), %s1768_s19, 8 }
  0x11   : > { %1404 = vmatprep.mubr.msk.bf16.mxu1 (!%p166_p9), %vm1715_vm0, %v1714_v1  ;;  %s190_s29 = scalar_lea.vmem (!%p166_p9), [#allocation3], %s1308_s28  ;;  %s2017_s8 = scalar_lea.hbm (!%p166_p9), %s2066_s4, %s1345_s5 }
  0x12   : > { %s1242_s30 = sshll.u32 (!%p166_p9), %s190_s29, 4  ;;  %s2012_s30 = int_to_ptr.vmem [resolvable:$true] %s1242_s30 }
  0x13   : > { %1383 = vmatpush3.bf16.msra.mxu0 (!%p166_p9), %v1512_v3  ;;  %1403 = vmatpush3.bf16.msra.mxu1 (!%p166_p9), %v1812_v4 }
  0x14   : > { %1408 = vmatprep.subr.bf16.mxu1 (!%p166_p9), %v1714_v1  ;;  %1432 = vmatprep.subr.bf16.mxu0 (!%p166_p9), %v1714_v1 }
  0x15   : > { %s192_s9 = scalar_select %p191_p10, %s1768_s19, 1 }
  0x16   : > { %1405 = vmatmul.mubr.bf16.vlgmr.msra.gmra.mrb[0].mxu1 %v1716_v7  ;;  %s1719_s19 = smov [#allocation3]  }
  0x17   : > { %s1344_s10 = sshll.u32 %s192_s9, 6  ;;  %1409 = vmatpush3.bf16.msra.mxu1 %v1802_v2  ;;  %1412 = vmatprep.mubr.msk.bf16.mxu1 %vm1715_vm0, %v1714_v1  ;;  %s2021_s9 = scalar_lea.sflag [#allocation4], %s188_s27 }
  0x18   : > { %s1821_s13 = scalar_lea.vmem %s2062_s0, %s1344_s10  ;;  %1410 = vmatprep.subr.bf16.mxu1 %v1714_v1  ;;  %s1650_s10 = scalar_lea.vmem %s2012_s30, 256 }
  0x19   : > { %v1514_v5 = vld [vmem:[%s1821_s13] sm:$0xff]   ;;  %v1515_v6 = vld [vmem:[%s1821_s13 + $0x8] sm:$0xff]   ;;  %p1651_p11 = scmp.ne.s32.totalorder %s2012_s30, %s1650_s10  ;;  %s1654_s11 = sshll.u32 %s1719_s19, 4  ;;  %s1655_s11 = int_to_ptr.vmem [resolvable:$false] %s1654_s11 }
  0x1a   : > { %1384 = vmatprep.mubr.msk.bf16.mxu0 %vm277_vm1, %v1514_v5  ;;  %s1656_s12 = scalar_lea.vmem %s1655_s11, 512  ;;  %p1657_p0 = scmp.lt.s32.totalorder %s2012_s30, %s1655_s11 }
  0x1b   : > { %1385 = vmatmul.mubr.msk.bf16.vlgmr.msra.gmra.mrb[0].mxu0 %vm277_vm1, %v1515_v6  ;;  %1411 = vmatpush3.bf16.msra.mxu1 %v1812_v4  ;;  %p1652_p12 = pnand %p1651_p11, %p1785_p5  ;;  %p1658_p1 = scmp.lt.s32.totalorder %s1656_s12, %s1650_s10 }
  0x1c   : > { %1433 = vmatpush3.bf16.msra.mxu0 %v1802_v2  ;;  %1416 = vmatprep.subr.bf16.mxu1 %v1714_v1 }
  0x1d   : > { %1434 = vmatprep.subr.bf16.mxu0 %v1714_v1  ;;  %p1653_p13 = pneg %p1652_p12  ;;  %p1659_p2 = por %p1658_p1, %p1657_p0 }
  0x1f   : > { %p1660_p3 = pnand %p1659_p2, %p1653_p13 }
  0x20   : > { %1435 = vmatpush3.bf16.msra.mxu0 %v1812_v4 }
  0x21   : > { %1448 = vmatprep.subr.bf16.mxu0 %v1714_v1 }
  0xe9   : > { %v470_v10 = vpop.f32.mrb[0].mxu1 }
  0xea   : > { %v1406_v12 = vpop.f32.mrb[1].mxu1 }
  0xeb   : > { %v473_v15 = vpop.f32.mrb[2].mxu1 }
  0xec   : > { %v1407_v17 = vpop.f32.mrb[3].mxu1 }
  0xee   : > { %v1845_v9 = vpop.f32.mrb[0].mxu0 }
  0xef   : > { %v336_v11 = vpop.f32.mrb[1].mxu0  ;;  %v345_v51 = vadd.f32 %v1845_v9, %v1843_v8 }
  0xf0   : > { %v337_v13 = vadd.f32 %v1843_v8, %v336_v11  ;;  %v1387_v14 = vpop.f32.mrb[2].mxu0 }
  0xf1   : > { %v339_v16 = vpop.f32.mrb[3].mxu0  ;;  %v348_v53 = vadd.f32 %v1387_v14, %v1843_v8 }
  0xf2   : > { %v477_v18 = vadd.f32 %v470_v10, %v337_v13  ;;  %v340_v19 = vadd.f32 %v1843_v8, %v339_v16 }
  0xf4   : > { %1522 = vtanh.f32 %v477_v18  ;;  %v478_v20 = vadd.f32 %v473_v15, %v340_v19  ;;  %v479_v23 = vsub.f32 0.0, %v477_v18 }
  0xf6   : > { %1524 = vtanh.f32 %v478_v20  ;;  %v481_v24 = vmul.f32 1.442695, %v479_v23  ;;  %v480_v25 = vsub.f32 0.0, %v478_v20 }
  0xf8   : > { %1526 = vpow2.f32 %v481_v24  ;;  %v483_v26 = vmul.f32 1.442695, %v480_v25 }
  0xfa   : > { %1528 = vpow2.f32 %v483_v26 }
  0xfe   : > { %v1523_v21 = vpop.eup %1522 }
  0xff   : > { %495 = vrot.lane.b32.xlu0 %v1523_v21, %s1717_s22  ;;  %v1516_v21 = vld [vmem:[%s1821_s13 + $0x10] sm:$0xff]  }
 0x100   : > { %v1525_v22 = vpop.eup %1524  ;;  %1388 = vmatprep.mubr.msk.bf16.mxu0 %vm277_vm1, %v1516_v21 }
 0x102   : > { %v1527_v27 = vpop.eup %1526 }
 0x103   : > { %497 = vrot.lane.b32.xlu0 %v1525_v22, %s1717_s22  ;;  %v485_v28 = vadd.f32 1.0, %v1527_v27  ;;  %v1517_v22 = vld [vmem:[%s1821_s13 + $0x18] sm:$0xff]  }
 0x104   : > { %v1529_v29 = vpop.eup %1528  ;;  %1389 = vmatmul.mubr.msk.bf16.gmra.mrb[4].mxu0 %vm277_vm1, %v1517_v22 }
 0x105   : > { %1530 = vrcp.f32 %v485_v28  ;;  %v486_v30 = vadd.f32 1.0, %v1529_v29 }
 0x107   : > { %1532 = vrcp.f32 %v486_v30 }
 0x10f   : > { %v1531_v31 = vpop.eup %1530 }
 0x110   : > { %v491_v37 = vmul.f32 0.0, %v1531_v31 }
 0x111   : > { %v1533_v34 = vpop.eup %1532 }
 0x112   : > { %v492_v40 = vmul.f32 0.0, %v1533_v34 }
 0x171   : > { %v496_v32 = vpop.permute.xlu0 %495 }
 0x172   : > { %v501_v33 = vmul.f32 %v1531_v31, %v496_v32 }
 0x174   : > { %505 = vrot.lane.b32.xlu1 %v501_v33, %s1718_s23 }
 0x175   : > { %v498_v35 = vpop.permute.xlu0 %497 }
 0x176   : > { %v502_v36 = vmul.f32 %v1533_v34, %v498_v35 }
 0x178   : > { %507 = vrot.lane.b32.xlu1 %v502_v36, %s1718_s23 }
 0x1d7   : > { %v1883_v30 = vpop.f32.mrb[4].mxu0 }
 0x1e6   : > { %v506_v38 = vpop.permute.xlu1 %505 }
 0x1e7   : > { %v511_v39 = vadd.f32 %v506_v38, %v491_v37 }
 0x1e9   : > { %1534 = vtanh.f32 %v511_v39 }
 0x1ea   : > { %v508_v41 = vpop.permute.xlu1 %507 }
 0x1eb   : > { %v512_v42 = vadd.f32 %v508_v41, %v492_v40 }
 0x1ed   : > { %1536 = vtanh.f32 %v512_v42 }
 0x1f3   : > { %v1535_v43 = vpop.eup %1534 }
 0x1f4   : > { %517 = vrot.lane.b32.xlu0 %v1535_v43, %s1717_s22 }
 0x1f7   : > { %v1537_v44 = vpop.eup %1536 }
 0x1f8   : > { %519 = vrot.lane.b32.xlu1 %v1537_v44, %s1717_s22 }
 0x266   : > { %v518_v45 = vpop.permute.xlu0 %517 }
 0x267   : > { %v523_v47 = vmul.f32 %v1531_v31, %v518_v45  ;;  %v352_v31 = vpop.f32.mrb[5].mxu0 }
 0x268   : > { %v1885_v32 = vpop.f32.mrb[6].mxu0  ;;  %v353_v35 = vadd.f32 %v1843_v8, %v352_v31 }
 0x269   : > { %v355_v33 = vpop.f32.mrb[7].mxu0 }
 0x26a   : > { %v520_v46 = vpop.permute.xlu1 %519  ;;  %v356_v37 = vadd.f32 %v1843_v8, %v355_v33 }
 0x26b   : > { %v524_v48 = vmul.f32 %v1533_v34, %v520_v46 }
 0x26d   : > { %v528_v49 = vpack.c.bf16 %v524_v48, %v523_v47 }
 0x26f   : > { %530 = vrot.lane.b32.xlu0 %v528_v49, %s1718_s23 }
 0x2e1   : > { %v531_v50 = vpop.permute.xlu0 %530 }
 0x2e2   : > { %1413 = vmatmul.mubr.msk.bf16.vlgmr.msra.gmra.mrb[4].mxu1 %vm277_vm1, %v531_v50 }
 0x2e3   : > { %1417 = vmatpush3.bf16.msra.mxu1 %v1802_v2  ;;  %1420 = vmatprep.mubr.msk.bf16.mxu1 %vm1715_vm0, %v1714_v1 }
 0x2e4   : > { %1418 = vmatprep.subr.bf16.mxu1 %v1714_v1 }
 0x2e7   : > { %1419 = vmatpush3.bf16.msra.mxu1 %v1812_v4 }
 0x2e8   : > { %1424 = vmatprep.subr.bf16.mxu1 %v1714_v1 }
 0x3b5   : > { %v569_v52 = vpop.f32.mrb[4].mxu1 }
 0x3b6   : > { %v576_v54 = vadd.f32 %v569_v52, %v345_v51  ;;  %v1414_v55 = vpop.f32.mrb[5].mxu1 }
 0x3b7   : > { %v572_v56 = vpop.f32.mrb[6].mxu1 }
 0x3b8   : > { %1538 = vtanh.f32 %v576_v54  ;;  %v577_v57 = vadd.f32 %v572_v56, %v348_v53  ;;  %v1415_v58 = vpop.f32.mrb[7].mxu1  ;;  %v578_v61 = vsub.f32 0.0, %v576_v54 }
 0x3ba   : > { %1540 = vtanh.f32 %v577_v57  ;;  %v579_v62 = vsub.f32 0.0, %v577_v57  ;;  %v580_v63 = vmul.f32 1.442695, %v578_v61 }
 0x3bc   : > { %v582_v0 = vmul.f32 1.442695, %v579_v62  ;;  %1542 = vpow2.f32 %v580_v63 }
 0x3be   : > { %1544 = vpow2.f32 %v582_v0 }
 0x3c2   : > { %v1539_v59 = vpop.eup %1538 }
 0x3c3   : > { %594 = vrot.lane.b32.xlu1 %v1539_v59, %s1717_s22 }
 0x3c4   : > { %v1541_v60 = vpop.eup %1540 }
 0x3c5   : > { %596 = vrot.lane.b32.xlu0 %v1541_v60, %s1717_s22 }
 0x3c6   : > { %v1543_v3 = vpop.eup %1542 }
 0x3c7   : > { %v584_v6 = vadd.f32 1.0, %v1543_v3 }
 0x3c8   : > { %v1545_v5 = vpop.eup %1544 }
 0x3c9   : > { %v585_v7 = vadd.f32 1.0, %v1545_v5  ;;  %1546 = vrcp.f32 %v584_v6 }
 0x3cb   : > { %1548 = vrcp.f32 %v585_v7 }
 0x3d3   : > { %v1547_v9 = vpop.eup %1546 }
 0x3d4   : > { %v590_v15 = vmul.f32 %v1547_v9, %v511_v39 }
 0x3d5   : > { %v1549_v12 = vpop.eup %1548 }
 0x3d6   : > { %v591_v18 = vmul.f32 %v1549_v12, %v512_v42 }
 0x435   : > { %v595_v10 = vpop.permute.xlu1 %594 }
 0x436   : > { %v600_v11 = vmul.f32 %v1547_v9, %v595_v10 }
 0x437   : > { %v597_v13 = vpop.permute.xlu0 %596 }
 0x438   : > { %v601_v14 = vmul.f32 %v1549_v12, %v597_v13  ;;  %604 = vrot.lane.b32.xlu1 %v600_v11, %s1718_s23  ;;  %v361_v13 = vadd.f32 %v1883_v30, %v1843_v8 }
 0x43a   : > { %606 = vrot.lane.b32.xlu0 %v601_v14, %s1718_s23 }
 0x4aa   : > { %v605_v16 = vpop.permute.xlu1 %604 }
 0x4ab   : > { %v1870_v17 = vadd.f32 %v605_v16, %v590_v15  ;;  %v364_v15 = vadd.f32 %v1885_v32, %v1843_v8 }
 0x4ac   : > { %v607_v19 = vpop.permute.xlu0 %606 }
 0x4ad   : > { %1550 = vtanh.f32 %v1870_v17  ;;  %v1873_v20 = vadd.f32 %v607_v19, %v591_v18 }
 0x4af   : > { %1552 = vtanh.f32 %v1873_v20 }
 0x4b7   : > { %v1551_v23 = vpop.eup %1550 }
 0x4b8   : > { %616 = vrot.lane.b32.xlu1 %v1551_v23, %s1717_s22 }
 0x4b9   : > { %v1553_v24 = vpop.eup %1552 }
 0x4ba   : > { %618 = vrot.lane.b32.xlu0 %v1553_v24, %s1717_s22 }
 0x52a   : > { %v617_v25 = vpop.permute.xlu1 %616 }
 0x52b   : > { %v622_v27 = vmul.f32 %v1547_v9, %v617_v25 }
 0x52c   : > { %v619_v26 = vpop.permute.xlu0 %618 }
 0x52d   : > { %v623_v28 = vmul.f32 %v1549_v12, %v619_v26 }
 0x52f   : > { %v627_v29 = vpack.c.bf16 %v623_v28, %v622_v27 }
 0x531   : > { %629 = vrot.lane.b32.xlu1 %v627_v29, %s1718_s23 }
 0x5a3   : > { %v630_v34 = vpop.permute.xlu1 %629 }
 0x5a4   : > { %1421 = vmatmul.mubr.msk.bf16.vlgmr.msra.gmra.mrb[8].mxu1 %vm277_vm1, %v630_v34 }
 0x5a5   : > { %1425 = vmatpush3.bf16.msra.mxu1 %v1802_v2  ;;  %1428 = vmatprep.mubr.msk.bf16.mxu1 %vm1715_vm0, %v1714_v1 }
 0x5a6   : > { %1426 = vmatprep.subr.bf16.mxu1 %v1714_v1 }
 0x5a9   : > { %1427 = vmatpush3.bf16.msra.mxu1 %v1812_v4 }
 0x5aa   : > { %1440 = vmatprep.subr.bf16.mxu1 %v1714_v1 }
 0x677   : > { %v668_v36 = vpop.f32.mrb[8].mxu1 }
 0x678   : > { %v675_v38 = vadd.f32 %v668_v36, %v353_v35  ;;  %v1422_v39 = vpop.f32.mrb[9].mxu1 }
 0x679   : > { %v671_v40 = vpop.f32.mrb[10].mxu1 }
 0x67a   : > { %1554 = vtanh.f32 %v675_v38  ;;  %v676_v41 = vadd.f32 %v671_v40, %v356_v37  ;;  %v1423_v42 = vpop.f32.mrb[11].mxu1  ;;  %v677_v45 = vsub.f32 0.0, %v675_v38 }
 0x67c   : > { %1556 = vtanh.f32 %v676_v41  ;;  %v678_v46 = vsub.f32 0.0, %v676_v41  ;;  %v679_v47 = vmul.f32 1.442695, %v677_v45  ;;  %v1520_v45 = vld [vmem:[%s1821_s13 + $0x30] sm:$0xff]  }
 0x67e   : > { %v681_v48 = vmul.f32 1.442695, %v678_v46  ;;  %1558 = vpow2.f32 %v679_v47  ;;  %v1521_v47 = vld [vmem:[%s1821_s13 + $0x38] sm:$0xff]  }
 0x680   : > { %1560 = vpow2.f32 %v681_v48 }
 0x684   : > { %v1555_v43 = vpop.eup %1554 }
 0x685   : > { %693 = vrot.lane.b32.xlu0 %v1555_v43, %s1717_s22  ;;  %v1518_v43 = vld [vmem:[%s1821_s13 + $0x20] sm:$0xff]  }
 0x686   : > { %v1557_v44 = vpop.eup %1556  ;;  %1392 = vmatprep.mubr.msk.bf16.mxu0 %vm277_vm1, %v1518_v43 }
 0x687   : > { %695 = vrot.lane.b32.xlu1 %v1557_v44, %s1717_s22  ;;  %v1519_v44 = vld [vmem:[%s1821_s13 + $0x28] sm:$0xff]  }
 0x688   : > { %v1559_v49 = vpop.eup %1558  ;;  %1393 = vmatmul.mubr.msk.bf16.gmra.mrb[8].mxu0 %vm277_vm1, %v1519_v44 }
 0x689   : > { %v683_v51 = vadd.f32 1.0, %v1559_v49  ;;  %1396 = vmatprep.mubr.msk.bf16.mxu0 %vm277_vm1, %v1520_v45 }
 0x68a   : > { %v1561_v50 = vpop.eup %1560 }
 0x68b   : > { %v684_v52 = vadd.f32 1.0, %v1561_v50  ;;  %1562 = vrcp.f32 %v683_v51 }
 0x68d   : > { %1564 = vrcp.f32 %v684_v52 }
 0x690   : > { %1397 = vmatmul.mubr.msk.bf16.gmra.mrb[12].mxu0 %vm277_vm1, %v1521_v47 }
 0x691   : > { %1436 = vmatprep.mubr.msk.bf16.mxu0 %vm1715_vm0, %v1714_v1 }
 0x695   : > { %v1563_v53 = vpop.eup %1562 }
 0x696   : > { %v689_v59 = vmul.f32 %v1563_v53, %v1870_v17 }
 0x697   : > { %v1565_v56 = vpop.eup %1564 }
 0x698   : > { %v690_v62 = vmul.f32 %v1565_v56, %v1873_v20 }
 0x6f7   : > { %v694_v54 = vpop.permute.xlu0 %693 }
 0x6f8   : > { %v699_v55 = vmul.f32 %v1563_v53, %v694_v54 }
 0x6f9   : > { %v696_v57 = vpop.permute.xlu1 %695 }
 0x6fa   : > { %v700_v58 = vmul.f32 %v1565_v56, %v696_v57  ;;  %703 = vrot.lane.b32.xlu0 %v699_v55, %s1718_s23 }
 0x6fc   : > { %705 = vrot.lane.b32.xlu1 %v700_v58, %s1718_s23 }
 0x75b   : > { %v1939_v54 = vpop.f32.mrb[8].mxu0 }
 0x75c   : > { %v368_v55 = vpop.f32.mrb[9].mxu0 }
 0x76c   : > { %v704_v60 = vpop.permute.xlu0 %703 }
 0x76d   : > { %v709_v61 = vadd.f32 %v704_v60, %v689_v59 }
 0x76e   : > { %v706_v63 = vpop.permute.xlu1 %705 }
 0x76f   : > { %1566 = vtanh.f32 %v709_v61  ;;  %v710_v0 = vadd.f32 %v706_v63, %v690_v62  ;;  %v369_v63 = vadd.f32 %v1843_v8, %v368_v55 }
 0x771   : > { %1568 = vtanh.f32 %v710_v0 }
 0x779   : > { %v1567_v3 = vpop.eup %1566 }
 0x77a   : > { %715 = vrot.lane.b32.xlu0 %v1567_v3, %s1717_s22 }
 0x77b   : > { %v1569_v5 = vpop.eup %1568 }
 0x77c   : > { %717 = vrot.lane.b32.xlu1 %v1569_v5, %s1717_s22 }
 0x7ec   : > { %v716_v6 = vpop.permute.xlu0 %715 }
 0x7ed   : > { %v721_v9 = vmul.f32 %v1563_v53, %v716_v6 }
 0x7ee   : > { %v718_v7 = vpop.permute.xlu1 %717 }
 0x7ef   : > { %v722_v10 = vmul.f32 %v1565_v56, %v718_v7  ;;  %v1941_v56 = vpop.f32.mrb[10].mxu0 }
 0x7f0   : > { %v371_v57 = vpop.f32.mrb[11].mxu0  ;;  %v380_v43 = vadd.f32 %v1941_v56, %v1843_v8 }
 0x7f1   : > { %v726_v11 = vpack.c.bf16 %v722_v10, %v721_v9  ;;  %v1943_v58 = vpop.f32.mrb[12].mxu0  ;;  %v372_v3 = vadd.f32 %v1843_v8, %v371_v57 }
 0x7f2   : > { %v1945_v59 = vpop.f32.mrb[13].mxu0 }
 0x7f3   : > { %728 = vrot.lane.b32.xlu0 %v726_v11, %s1718_s23  ;;  %v1947_v60 = vpop.f32.mrb[14].mxu0 }
 0x865   : > { %v729_v12 = vpop.permute.xlu0 %728 }
 0x866   : > { %1429 = vmatmul.mubr.msk.bf16.vlgmr.msra.gmra.mrb[12].mxu1 %vm277_vm1, %v729_v12 }
 0x867   : > { %1441 = vmatpush3.bf16.msra.mxu1 %v1802_v2  ;;  %1444 = vmatprep.mubr.msk.bf16.mxu1 %vm1715_vm0, %v1714_v1 }
 0x868   : > { %1442 = vmatprep.subr.bf16.mxu1 %v1714_v1 }
 0x86b   : > { %1443 = vmatpush3.bf16.msra.mxu1 %v1812_v4 }
 0x86c   : > { %1456 = vmatprep.subr.bf16.mxu1 %v1714_v1 }
 0x939   : > { %v767_v14 = vpop.f32.mrb[12].mxu1 }
 0x93a   : > { %v774_v16 = vadd.f32 %v767_v14, %v361_v13  ;;  %v1430_v17 = vpop.f32.mrb[13].mxu1 }
 0x93b   : > { %v770_v18 = vpop.f32.mrb[14].mxu1 }
 0x93c   : > { %1570 = vtanh.f32 %v774_v16  ;;  %v775_v19 = vadd.f32 %v770_v18, %v364_v15  ;;  %v1431_v20 = vpop.f32.mrb[15].mxu1  ;;  %v776_v23 = vsub.f32 0.0, %v774_v16 }
 0x93e   : > { %1572 = vtanh.f32 %v775_v19  ;;  %v777_v24 = vsub.f32 0.0, %v775_v19  ;;  %v778_v25 = vmul.f32 1.442695, %v776_v23 }
 0x940   : > { %v780_v26 = vmul.f32 1.442695, %v777_v24  ;;  %1574 = vpow2.f32 %v778_v25 }
 0x942   : > { %1576 = vpow2.f32 %v780_v26 }
 0x946   : > { %v1571_v21 = vpop.eup %1570 }
 0x947   : > { %792 = vrot.lane.b32.xlu1 %v1571_v21, %s1717_s22 }
 0x948   : > { %v1573_v22 = vpop.eup %1572 }
 0x949   : > { %794 = vrot.lane.b32.xlu0 %v1573_v22, %s1717_s22 }
 0x94a   : > { %v1575_v27 = vpop.eup %1574 }
 0x94b   : > { %v782_v29 = vadd.f32 1.0, %v1575_v27 }
 0x94c   : > { %v1577_v28 = vpop.eup %1576 }
 0x94d   : > { %v783_v30 = vadd.f32 1.0, %v1577_v28  ;;  %1578 = vrcp.f32 %v782_v29 }
 0x94f   : > { %1580 = vrcp.f32 %v783_v30 }
 0x957   : > { %v1579_v31 = vpop.eup %1578 }
 0x958   : > { %v788_v37 = vmul.f32 %v1579_v31, %v709_v61  ;;  %v1949_v61 = vpop.f32.mrb[15].mxu0 }
 0x959   : > { %v1581_v34 = vpop.eup %1580 }
 0x95a   : > { %v789_v40 = vmul.f32 %v1581_v34, %v710_v0 }
 0x9b9   : > { %v793_v32 = vpop.permute.xlu1 %792 }
 0x9ba   : > { %v798_v33 = vmul.f32 %v1579_v31, %v793_v32 }
 0x9bb   : > { %v795_v35 = vpop.permute.xlu0 %794 }
 0x9bc   : > { %v799_v36 = vmul.f32 %v1581_v34, %v795_v35  ;;  %802 = vrot.lane.b32.xlu1 %v798_v33, %s1718_s23 }
 0x9be   : > { %804 = vrot.lane.b32.xlu0 %v799_v36, %s1718_s23 }
 0xa2e   : > { %v803_v38 = vpop.permute.xlu1 %802 }
 0xa2f   : > { %v1920_v39 = vadd.f32 %v803_v38, %v788_v37 }
 0xa30   : > { %v805_v41 = vpop.permute.xlu0 %804 }
 0xa31   : > { %1582 = vtanh.f32 %v1920_v39  ;;  %v1923_v42 = vadd.f32 %v805_v41, %v789_v40  ;;  %v377_v41 = vadd.f32 %v1939_v54, %v1843_v8 }
 0xa33   : > { %1584 = vtanh.f32 %v1923_v42 }
 0xa3b   : > { %v1583_v46 = vpop.eup %1582 }
 0xa3c   : > { %814 = vrot.lane.b32.xlu1 %v1583_v46, %s1717_s22 }
 0xa3d   : > { %v1585_v48 = vpop.eup %1584 }
 0xa3e   : > { %816 = vrot.lane.b32.xlu0 %v1585_v48, %s1717_s22 }
 0xaae   : > { %v815_v49 = vpop.permute.xlu1 %814 }
 0xaaf   : > { %v820_v51 = vmul.f32 %v1579_v31, %v815_v49 }
 0xab0   : > { %v817_v50 = vpop.permute.xlu0 %816 }
 0xab1   : > { %v821_v52 = vmul.f32 %v1581_v34, %v817_v50 }
 0xab3   : > { %v825_v53 = vpack.c.bf16 %v821_v52, %v820_v51 }
 0xab5   : > { %827 = vrot.lane.b32.xlu1 %v825_v53, %s1718_s23 }
 0xb27   : > { %v828_v62 = vpop.permute.xlu1 %827 }
 0xb28   : > { %1437 = vmatmul.mubr.msk.bf16.vlgmr.msra.gmra.mrb[16].mxu0 %vm277_vm1, %v828_v62 }
 0xb29   : > { %1449 = vmatpush3.bf16.msra.mxu0 %v1802_v2  ;;  %1452 = vmatprep.mubr.msk.bf16.mxu0 %vm1715_vm0, %v1714_v1 }
 0xb2a   : > { %1450 = vmatprep.subr.bf16.mxu0 %v1714_v1 }
 0xb2d   : > { %1451 = vmatpush3.bf16.msra.mxu0 %v1812_v4 }
 0xbfb   : > { %v866_v0 = vpop.f32.mrb[16].mxu0 }
 0xbfc   : > { %v873_v5 = vadd.f32 %v866_v0, %v369_v63  ;;  %v1438_v6 = vpop.f32.mrb[17].mxu0 }
 0xbfd   : > { %v869_v7 = vpop.f32.mrb[18].mxu0 }
 0xbfe   : > { %1586 = vtanh.f32 %v873_v5  ;;  %v874_v9 = vadd.f32 %v869_v7, %v372_v3  ;;  %v1439_v10 = vpop.f32.mrb[19].mxu0  ;;  %v875_v13 = vsub.f32 0.0, %v873_v5 }
 0xc00   : > { %1588 = vtanh.f32 %v874_v9  ;;  %v876_v14 = vsub.f32 0.0, %v874_v9  ;;  %v877_v15 = vmul.f32 1.442695, %v875_v13 }
 0xc02   : > { %v879_v16 = vmul.f32 1.442695, %v876_v14  ;;  %1590 = vpow2.f32 %v877_v15 }
 0xc04   : > { %1592 = vpow2.f32 %v879_v16 }
 0xc08   : > { %v1587_v11 = vpop.eup %1586 }
 0xc09   : > { %891 = vrot.lane.b32.xlu0 %v1587_v11, %s1717_s22 }
 0xc0a   : > { %v1589_v12 = vpop.eup %1588 }
 0xc0b   : > { %893 = vrot.lane.b32.xlu1 %v1589_v12, %s1717_s22 }
 0xc0c   : > { %v1591_v17 = vpop.eup %1590 }
 0xc0d   : > { %v881_v19 = vadd.f32 1.0, %v1591_v17 }
 0xc0e   : > { %v1593_v18 = vpop.eup %1592 }
 0xc0f   : > { %v882_v20 = vadd.f32 1.0, %v1593_v18  ;;  %1594 = vrcp.f32 %v881_v19 }
 0xc11   : > { %1596 = vrcp.f32 %v882_v20  ;;  %v385_v20 = vadd.f32 %v1843_v8, %v1945_v59 }
 0xc19   : > { %v1595_v21 = vpop.eup %1594 }
 0xc1a   : > { %v887_v27 = vmul.f32 %v1595_v21, %v1920_v39 }
 0xc1b   : > { %v1597_v24 = vpop.eup %1596 }
 0xc1c   : > { %v888_v30 = vmul.f32 %v1597_v24, %v1923_v42 }
 0xc7b   : > { %v892_v22 = vpop.permute.xlu0 %891 }
 0xc7c   : > { %v897_v23 = vmul.f32 %v1595_v21, %v892_v22  ;;  %v388_v22 = vadd.f32 %v1843_v8, %v1949_v61 }
 0xc7d   : > { %v894_v25 = vpop.permute.xlu1 %893 }
 0xc7e   : > { %v898_v26 = vmul.f32 %v1597_v24, %v894_v25  ;;  %901 = vrot.lane.b32.xlu0 %v897_v23, %s1718_s23 }
 0xc80   : > { %903 = vrot.lane.b32.xlu1 %v898_v26, %s1718_s23 }
 0xcf0   : > { %v902_v28 = vpop.permute.xlu0 %901 }
 0xcf1   : > { %v907_v29 = vadd.f32 %v902_v28, %v887_v27 }
 0xcf2   : > { %v904_v31 = vpop.permute.xlu1 %903 }
 0xcf3   : > { %1598 = vtanh.f32 %v907_v29  ;;  %v908_v32 = vadd.f32 %v904_v31, %v888_v30 }
 0xcf5   : > { %1600 = vtanh.f32 %v908_v32 }
 0xcfd   : > { %v1599_v33 = vpop.eup %1598 }
 0xcfe   : > { %913 = vrot.lane.b32.xlu0 %v1599_v33, %s1717_s22 }
 0xcff   : > { %v1601_v34 = vpop.eup %1600 }
 0xd00   : > { %915 = vrot.lane.b32.xlu1 %v1601_v34, %s1717_s22 }
 0xd70   : > { %v914_v35 = vpop.permute.xlu0 %913 }
 0xd71   : > { %v919_v37 = vmul.f32 %v1595_v21, %v914_v35 }
 0xd72   : > { %v916_v36 = vpop.permute.xlu1 %915 }
 0xd73   : > { %v920_v38 = vmul.f32 %v1597_v24, %v916_v36 }
 0xd75   : > { %v924_v40 = vpack.c.bf16 %v920_v38, %v919_v37 }
 0xd77   : > { %926 = vrot.lane.b32.xlu0 %v924_v40, %s1718_s23 }
 0xde9   : > { %v927_v39 = vpop.permute.xlu0 %926 }
 0xdea   : > { %1445 = vmatmul.mubr.msk.bf16.vlgmr.msra.gmra.mrb[16].mxu1 %vm277_vm1, %v927_v39 }
 0xdeb   : > { %1457 = vmatpush3.bf16.msra.mxu1 %v1802_v2  ;;  %1460 = vmatprep.mubr.msk.bf16.mxu1 %vm1715_vm0, %v1714_v1 }
 0xdec   : > { %1458 = vmatprep.subr.bf16.mxu1 %v1714_v1 }
 0xdef   : > { %1459 = vmatpush3.bf16.msra.mxu1 %v1812_v4 }
 0xebd   : > { %v965_v42 = vpop.f32.mrb[16].mxu1 }
 0xebe   : > { %v972_v44 = vadd.f32 %v965_v42, %v377_v41  ;;  %v1446_v45 = vpop.f32.mrb[17].mxu1 }
 0xebf   : > { %v968_v46 = vpop.f32.mrb[18].mxu1 }
 0xec0   : > { %1602 = vtanh.f32 %v972_v44  ;;  %v973_v47 = vadd.f32 %v968_v46, %v380_v43  ;;  %v1447_v2 = vpop.f32.mrb[19].mxu1  ;;  %v974_v4 = vsub.f32 0.0, %v972_v44 }
 0xec2   : > { %1604 = vtanh.f32 %v973_v47  ;;  %v975_v49 = vsub.f32 0.0, %v973_v47  ;;  %v976_v50 = vmul.f32 1.442695, %v974_v4 }
 0xec4   : > { %v978_v51 = vmul.f32 1.442695, %v975_v49  ;;  %1606 = vpow2.f32 %v976_v50 }
 0xec6   : > { %1608 = vpow2.f32 %v978_v51 }
 0xeca   : > { %v1603_v48 = vpop.eup %1602 }
 0xecb   : > { %990 = vrot.lane.b32.xlu1 %v1603_v48, %s1717_s22 }
 0xecc   : > { %v1605_v1 = vpop.eup %1604 }
 0xecd   : > { %992 = vrot.lane.b32.xlu0 %v1605_v1, %s1717_s22 }
 0xece   : > { %v1607_v52 = vpop.eup %1606 }
 0xecf   : > { %v980_v54 = vadd.f32 1.0, %v1607_v52 }
 0xed0   : > { %v1609_v53 = vpop.eup %1608 }
 0xed1   : > { %v981_v55 = vadd.f32 1.0, %v1609_v53  ;;  %1610 = vrcp.f32 %v980_v54  ;;  %v393_v53 = vadd.f32 %v1943_v58, %v1843_v8 }
 0xed3   : > { %1612 = vrcp.f32 %v981_v55  ;;  %v396_v55 = vadd.f32 %v1947_v60, %v1843_v8 }
 0xedb   : > { %v1611_v56 = vpop.eup %1610 }
 0xedc   : > { %v986_v5 = vmul.f32 %v1611_v56, %v907_v29 }
 0xedd   : > { %v1613_v63 = vpop.eup %1612 }
 0xede   : > { %v987_v9 = vmul.f32 %v1613_v63, %v908_v32 }
 0xf3d   : > { %v991_v57 = vpop.permute.xlu1 %990 }
 0xf3e   : > { %v996_v62 = vmul.f32 %v1611_v56, %v991_v57 }
 0xf3f   : > { %v993_v0 = vpop.permute.xlu0 %992 }
 0xf40   : > { %v997_v3 = vmul.f32 %v1613_v63, %v993_v0  ;;  %1000 = vrot.lane.b32.xlu1 %v996_v62, %s1718_s23 }
 0xf42   : > { %1002 = vrot.lane.b32.xlu0 %v997_v3, %s1718_s23 }
 0xfb2   : > { %v1001_v6 = vpop.permute.xlu1 %1000 }
 0xfb3   : > { %v1006_v7 = vadd.f32 %v1001_v6, %v986_v5 }
 0xfb4   : > { %v1003_v10 = vpop.permute.xlu0 %1002 }
 0xfb5   : > { %1614 = vtanh.f32 %v1006_v7  ;;  %v1007_v11 = vadd.f32 %v1003_v10, %v987_v9 }
 0xfb7   : > { %1616 = vtanh.f32 %v1007_v11 }
 0xfbf   : > { %v1615_v12 = vpop.eup %1614 }
 0xfc0   : > { %1012 = vrot.lane.b32.xlu1 %v1615_v12, %s1717_s22 }
 0xfc1   : > { %v1617_v13 = vpop.eup %1616 }
 0xfc2   : > { %1014 = vrot.lane.b32.xlu0 %v1617_v13, %s1717_s22 }
0x1032   : > { %v1013_v14 = vpop.permute.xlu1 %1012 }
0x1033   : > { %v1018_v16 = vmul.f32 %v1611_v56, %v1013_v14 }
0x1034   : > { %v1015_v15 = vpop.permute.xlu0 %1014 }
0x1035   : > { %v1019_v17 = vmul.f32 %v1613_v63, %v1015_v15 }
0x1037   : > { %v1023_v18 = vpack.c.bf16 %v1019_v17, %v1018_v16 }
0x1039   : > { %1025 = vrot.lane.b32.xlu1 %v1023_v18, %s1718_s23 }
0x10ab   : > { %v1026_v19 = vpop.permute.xlu1 %1025 }
0x10ac   : > { %1453 = vmatmul.mubr.msk.bf16.vlgmr.msra.gmra.mrb[20].mxu0 %vm277_vm1, %v1026_v19 }
0x117f   : > { %v1064_v21 = vpop.f32.mrb[20].mxu0 }
0x1180   : > { %v1071_v23 = vadd.f32 %v1064_v21, %v385_v20  ;;  %v1454_v24 = vpop.f32.mrb[21].mxu0 }
0x1181   : > { %v1067_v25 = vpop.f32.mrb[22].mxu0 }
0x1182   : > { %1618 = vtanh.f32 %v1071_v23  ;;  %v1072_v26 = vadd.f32 %v1067_v25, %v388_v22  ;;  %v1455_v27 = vpop.f32.mrb[23].mxu0  ;;  %v1073_v30 = vsub.f32 0.0, %v1071_v23 }
0x1184   : > { %1620 = vtanh.f32 %v1072_v26  ;;  %v1074_v31 = vsub.f32 0.0, %v1072_v26  ;;  %v1075_v59 = vmul.f32 1.442695, %v1073_v30 }
0x1186   : > { %v1077_v32 = vmul.f32 1.442695, %v1074_v31  ;;  %1622 = vpow2.f32 %v1075_v59 }
0x1188   : > { %1624 = vpow2.f32 %v1077_v32 }
0x118c   : > { %v1619_v28 = vpop.eup %1618 }
0x118d   : > { %1089 = vrot.lane.b32.xlu0 %v1619_v28, %s1717_s22 }
0x118e   : > { %v1621_v29 = vpop.eup %1620 }
0x118f   : > { %1091 = vrot.lane.b32.xlu1 %v1621_v29, %s1717_s22 }
0x1190   : > { %v1623_v61 = vpop.eup %1622 }
0x1191   : > { %v1079_v34 = vadd.f32 1.0, %v1623_v61 }
0x1192   : > { %v1625_v33 = vpop.eup %1624 }
0x1193   : > { %v1080_v35 = vadd.f32 1.0, %v1625_v33  ;;  %1626 = vrcp.f32 %v1079_v34 }
0x1195   : > { %1628 = vrcp.f32 %v1080_v35 }
0x119d   : > { %v1627_v36 = vpop.eup %1626 }
0x119e   : > { %v1085_v42 = vmul.f32 %v1627_v36, %v1006_v7 }
0x119f   : > { %v1629_v40 = vpop.eup %1628 }
0x11a0   : > { %v1086_v45 = vmul.f32 %v1629_v40, %v1007_v11 }
0x11ff   : > { %v1090_v37 = vpop.permute.xlu0 %1089 }
0x1200   : > { %v1095_v38 = vmul.f32 %v1627_v36, %v1090_v37 }
0x1201   : > { %v1092_v39 = vpop.permute.xlu1 %1091 }
0x1202   : > { %v1096_v41 = vmul.f32 %v1629_v40, %v1092_v39  ;;  %1099 = vrot.lane.b32.xlu0 %v1095_v38, %s1718_s23 }
0x1204   : > { %1101 = vrot.lane.b32.xlu1 %v1096_v41, %s1718_s23 }
0x1274   : > { %v1100_v43 = vpop.permute.xlu0 %1099 }
0x1275   : > { %v1105_v44 = vadd.f32 %v1100_v43, %v1085_v42 }
0x1276   : > { %v1102_v46 = vpop.permute.xlu1 %1101 }
0x1277   : > { %1630 = vtanh.f32 %v1105_v44  ;;  %v1106_v47 = vadd.f32 %v1102_v46, %v1086_v45 }
0x1279   : > { %1632 = vtanh.f32 %v1106_v47 }
0x1281   : > { %v1631_v2 = vpop.eup %1630 }
0x1282   : > { %1111 = vrot.lane.b32.xlu0 %v1631_v2, %s1717_s22 }
0x1283   : > { %v1633_v48 = vpop.eup %1632 }
0x1284   : > { %1113 = vrot.lane.b32.xlu1 %v1633_v48, %s1717_s22 }
0x12f4   : > { %v1112_v1 = vpop.permute.xlu0 %1111 }
0x12f5   : > { %v1117_v49 = vmul.f32 %v1627_v36, %v1112_v1 }
0x12f6   : > { %v1114_v4 = vpop.permute.xlu1 %1113 }
0x12f7   : > { %v1118_v50 = vmul.f32 %v1629_v40, %v1114_v4 }
0x12f9   : > { %v1122_v51 = vpack.c.bf16 %v1118_v50, %v1117_v49 }
0x12fb   : > { %1124 = vrot.lane.b32.xlu0 %v1122_v51, %s1718_s23 }
0x136d   : > { %v1125_v52 = vpop.permute.xlu0 %1124 }
0x136e   : > { %1461 = vmatmul.mubr.msk.bf16.vlgmr.msra.gmra.mrb[20].mxu1 %vm277_vm1, %v1125_v52 }
0x1441   : > { %v1163_v54 = vpop.f32.mrb[20].mxu1 }
0x1442   : > { %v1170_v56 = vadd.f32 %v1163_v54, %v393_v53  ;;  %v1462_v57 = vpop.f32.mrb[21].mxu1 }
0x1443   : > { %v1166_v62 = vpop.f32.mrb[22].mxu1 }
0x1444   : > { %1634 = vtanh.f32 %v1170_v56  ;;  %v1171_v63 = vadd.f32 %v1166_v62, %v396_v55  ;;  %v1463_v0 = vpop.f32.mrb[23].mxu1  ;;  %v1172_v6 = vsub.f32 0.0, %v1170_v56 }
0x1446   : > { %1636 = vtanh.f32 %v1171_v63  ;;  %v1173_v7 = vsub.f32 0.0, %v1171_v63  ;;  %v1174_v58 = vmul.f32 1.442695, %v1172_v6 }
0x1448   : > { %v1176_v9 = vmul.f32 1.442695, %v1173_v7  ;;  %1638 = vpow2.f32 %v1174_v58 }
0x144a   : > { %1640 = vpow2.f32 %v1176_v9 }
0x144e   : > { %v1635_v3 = vpop.eup %1634 }
0x144f   : > { %1188 = vrot.lane.b32.xlu1 %v1635_v3, %s1717_s22 }
0x1450   : > { %v1637_v5 = vpop.eup %1636 }
0x1451   : > { %1190 = vrot.lane.b32.xlu0 %v1637_v5, %s1717_s22 }
0x1452   : > { %v1639_v8 = vpop.eup %1638 }
0x1453   : > { %v1178_v10 = vadd.f32 1.0, %v1639_v8 }
0x1454   : > { %v1641_v60 = vpop.eup %1640 }
0x1455   : > { %v1179_v11 = vadd.f32 1.0, %v1641_v60  ;;  %1642 = vrcp.f32 %v1178_v10 }
0x1457   : > { %1644 = vrcp.f32 %v1179_v11 }
0x145f   : > { %v1643_v12 = vpop.eup %1642 }
0x1460   : > { %v1184_v18 = vmul.f32 %v1643_v12, %v1105_v44 }
0x1461   : > { %v1645_v15 = vpop.eup %1644 }
0x1462   : > { %v1185_v21 = vmul.f32 %v1645_v15, %v1106_v47 }
0x14c1   : > { %v1189_v13 = vpop.permute.xlu1 %1188 }
0x14c2   : > { %v1194_v14 = vmul.f32 %v1643_v12, %v1189_v13 }
0x14c3   : > { %v1191_v16 = vpop.permute.xlu0 %1190 }
0x14c4   : > { %v1195_v17 = vmul.f32 %v1645_v15, %v1191_v16  ;;  %1198 = vrot.lane.b32.xlu1 %v1194_v14, %s1718_s23 }
0x14c6   : > { %1200 = vrot.lane.b32.xlu0 %v1195_v17, %s1718_s23 }
0x1536   : > { %v1199_v19 = vpop.permute.xlu1 %1198 }
0x1537   : > { %v1204_v20 = vadd.f32 %v1199_v19, %v1184_v18 }
0x1538   : > { %v1201_v22 = vpop.permute.xlu0 %1200 }
0x1539   : > { %1646 = vtanh.f32 %v1204_v20  ;;  %v1205_v23 = vadd.f32 %v1201_v22, %v1185_v21 }
0x153b   : > { %1648 = vtanh.f32 %v1205_v23 }
0x1543   : > { %v1647_v24 = vpop.eup %1646 }
0x1544   : > { %1210 = vrot.lane.b32.xlu1 %v1647_v24, %s1717_s22 }
0x1545   : > { %v1649_v25 = vpop.eup %1648 }
0x1546   : > { %1212 = vrot.lane.b32.xlu0 %v1649_v25, %s1717_s22 }
0x15b6   : > { %v1211_v26 = vpop.permute.xlu1 %1210 }
0x15b7   : > { %v1216_v27 = vmul.f32 %v1643_v12, %v1211_v26 }
0x15b8   : > { %v1213_v28 = vpop.permute.xlu0 %1212 }
0x15b9   : > { %v1217_v29 = vmul.f32 %v1645_v15, %v1213_v28  ;;  %1220 = vrot.lane.b32.xlu1 %v1216_v27, %s1718_s23 }
0x15bb   : > { %1222 = vrot.lane.b32.xlu0 %v1217_v29, %s1718_s23 }
0x162b   : > { %v1221_v30 = vpop.permute.xlu1 %1220 }
0x162c   : > { %1226 = vst.msk [vmem:[%s190_s29] sm:$0xff] %vm277_vm1, %v1221_v30 }
0x162d   : > { %v1223_v31 = vpop.permute.xlu0 %1222 }
0x162e   : > { %1227 = vst.msk [vmem:[%s190_s29 + $0x8] sm:$0xff] %vm277_vm1, %v1223_v31 }
0x162f   : > { %1663 = shalt.err (!%p1660_p3)
}
0x1630   : > { %s1664_s13 = scalar_lea.hbm %s2017_s8, 256  ;;  %s1668_s22 = scalar_lea.hbm %s2066_s4, 512 }
0x1631   : > { %p1665_p4 = scmp.ne.s32.totalorder %s2017_s8, %s1664_s13  ;;  %p1669_p9 = scmp.lt.u32.totalorder %s2017_s8, %s2066_s4 }
0x1632   : > { %p1670_p10 = scmp.lt.u32.totalorder %s1668_s22, %s1664_s13  ;;  %p1672_p12 = scmp.lt.u32.totalorder %s1664_s13, %s2017_s8 }
0x1633   : > { %p1666_p7 = pnand %p1665_p4, %p1785_p5 }
0x1634   : > { %p1671_p11 = por %p1670_p10, %p1669_p9 }
0x1635   : > { %p1667_p8 = pneg %p1666_p7 }
0x1636   : > { %p1673_p13 = por %p1672_p12, %p1671_p11 }
0x1638   : > { %p1674_p0 = pnand %p1673_p13, %p1667_p8 }
0x163a   : > { %1677 = shalt.err (!%p1674_p0)
}
0x163b   : > { %s1720_s28 = smov 128   ;;  %s1721_s29 = smov 8  }
0x163c   : > { %1464 = dma.vmem_to_hbm [thread:$0]  (%p1785_p5), %s2012_s30, 256, %s2017_s8, %s2021_s9, %s1720_s28, %s1720_s28, %s1721_s29  }
0x163d PF: > { %p1470_p1 = scmp.ge.s32.totalorder %s1712_s18, 2  ;;  %s1257_s5 = sand.u32 1, %s1700_s15  }
0x163e   : > { %s1258_s6 = scalar_lea.sflag [#allocation4], %s1257_s5 }
0x163f   : > { %p1467_p2 = pnand %p1470_p1, %p1789_p6 }
0x1641   : > { %1695 = dma.done.wait (!%p1467_p2), %s1258_s6, 256  }
0x1642   : > { %1697 = vsyncadd (!%p1467_p2), %s1258_s6, 4294967040  ;;  %p14_p3 = scmp.ge.s32.totalorder %s1772_s21, 4   ;;  %s2069_s15 = smov %s1704_s16 }
0x1643   : > { %s2070_s16 = smov %s1708_s17  ;;  %s2071_s17 = smov %s1783_s24 }
0x1644   : > { %s2072_s18 = smov %s1772_s21  ;;  %16 = sbr.rel (!%p14_p3) target bundleno = 3 (0x3), region = 78 }
0x164b   :  { %1263 = vsyncpa [#allocation4], 1 }
0x164c   :  { %1265 = vsyncpa [#allocation4 + $0x1], 1 }

</bundles_post_ra>
